<compile_context>
chip_gen: v7x
topology: tpu7x:2x2x1
jax: 0.10.0
libtpu: 0.0.40
codegen_flags: <defaults>
</compile_context>

<pallas_src>
import jax
import jax.numpy as jnp
from jax.experimental import pallas as pl
from jax.experimental.pallas import tpu as pltpu

EPS = 1e-6
INIT_BIAS = 0.1   # nn.Parameter(torch.tensor(init_bias)) -> scalar learnable bias

_LANE = 128
# (2048, 128) f32 = 1 MiB per array per pipeline buffer.
_TARGET_BLOCK_ROWS = 2048


def _modrelu_kernel(bias_ref, re_ref, im_ref, ore_ref, oim_ref):
    # bias_ref: (1,) f32 in SMEM (the learnable scalar bias)
    b = bias_ref[0]
    re = re_ref[...]
    im = im_ref[...]
    mag = jnp.sqrt(re * re + im * im)            # |z|
    gated = jnp.maximum(mag + b, 0.0)            # relu(|z| + bias)
    scale = gated / (mag + EPS)                  # relu(|z|+b) / (|z|+eps)
    ore_ref[...] = re * scale                    # gated * phase  (real part)
    oim_ref[...] = im * scale                    # gated * phase  (imag part)


def _choose_block_rows(rows: int) -> int:
    if rows <= _TARGET_BLOCK_ROWS:
        return rows                # single full-extent block (always legal)
    return _TARGET_BLOCK_ROWS      # multiple of 8; guarantees grid >= 2


def learnable_modrelu(z_re: jax.Array, z_im: jax.Array, bias: jax.Array):
    """Apply LearnableModReLU elementwise. z_re/z_im: float32 arrays (any shape)."""
    assert z_re.shape == z_im.shape
    orig_shape = z_re.shape
    total = z_re.size

    # Lane-dense slab (rows, 128).  Pad only when total is not a multiple of
    # 128 -- for a memory-bound elementwise op, pad + post-slice are full
    # extra HBM passes, so they are guarded.
    pad = (-total) % _LANE
    re_flat = z_re.reshape(-1)
    im_flat = z_im.reshape(-1)
    if pad:
        re_flat = jnp.pad(re_flat, (0, pad))
        im_flat = jnp.pad(im_flat, (0, pad))
    rows = (total + pad) // _LANE
    re2 = re_flat.reshape(rows, _LANE)
    im2 = im_flat.reshape(rows, _LANE)

    block_rows = _choose_block_rows(rows)
    grid = (pl.cdiv(rows, block_rows),)   # ragged last block handled by Pallas

    bias_arr = jnp.asarray(bias, dtype=jnp.float32).reshape(1)

    tile_spec = pl.BlockSpec((block_rows, _LANE), lambda i: (i, 0))
    smem_spec = pl.BlockSpec(memory_space=pltpu.MemorySpace.SMEM)

    out_re, out_im = pl.pallas_call(
        _modrelu_kernel,
        out_shape=(
            jax.ShapeDtypeStruct((rows, _LANE), jnp.float32),
            jax.ShapeDtypeStruct((rows, _LANE), jnp.float32),
        ),
        grid_spec=pltpu.PrefetchScalarGridSpec(
            num_scalar_prefetch=0,
            grid=grid,
            in_specs=[smem_spec, tile_spec, tile_spec],
            out_specs=[tile_spec, tile_spec],
        ),
        compiler_params=pltpu.CompilerParams(
            dimension_semantics=("parallel",)),
    )(bias_arr, re2, im2)

    if pad:
        out_re = out_re.reshape(-1)[:total]
        out_im = out_im.reshape(-1)[:total]
    return out_re.reshape(orig_shape), out_im.reshape(orig_shape)


def _reference(z_re, z_im, bias):
    mag = jnp.sqrt(z_re * z_re + z_im * z_im)
    gated = jnp.maximum(mag + bias, 0.0)
    scale = gated / (mag + EPS)
    return z_re * scale, z_im * scale


if __name__ == "__main__":
    key = jax.random.PRNGKey(0)
    k_re, k_im = jax.random.split(key)
    B, C, H, W = 2, 4, 16, 16                       # NCHW
    z_re = jax.random.normal(k_re, (B, C, H, W), dtype=jnp.float32)
    z_im = jax.random.normal(k_im, (B, C, H, W), dtype=jnp.float32)

    # Deterministic parameter init, exactly as in the module __init__.
    bias = jnp.float32(INIT_BIAS)

    out_re, out_im = learnable_modrelu(z_re, z_im, bias)
    out_re = jax.block_until_ready(out_re)
    out_im = jax.block_until_ready(out_im)

    ref_re, ref_im = _reference(z_re, z_im, bias)
    assert jnp.allclose(out_re, ref_re, atol=1e-5, rtol=1e-5)
    assert jnp.allclose(out_im, ref_im, atol=1e-5, rtol=1e-5)
    print("KERNEL_OK")
</pallas_src>

<mosaic_0001>
module attributes {stable_mosaic.version = 11 : i64} {
  func.func @_modrelu_kernel(%arg0: i32, %arg1: memref<1xf32, #tpu.memory_space<smem>>, %arg2: memref<16x128xf32, #tpu.memory_space<vmem>>, %arg3: memref<16x128xf32, #tpu.memory_space<vmem>>, %arg4: memref<16x128xf32, #tpu.memory_space<vmem>>, %arg5: memref<16x128xf32, #tpu.memory_space<vmem>>) attributes {dimension_semantics = [#tpu.dimension_semantics<parallel>], iteration_bounds = array<i64: 1>, scalar_prefetch = 0 : i64, scratch_operands = 0 : i64, tpu.core_type = #tpu.core_type<tc>, window_params = [{transform_indices = @transform_0, window_bounds = array<i64: 1>}, {transform_indices = @transform_1, window_bounds = array<i64: 16, 128>}, {transform_indices = @transform_2, window_bounds = array<i64: 16, 128>}, {transform_indices = @transform_3, window_bounds = array<i64: 16, 128>}, {transform_indices = @transform_4, window_bounds = array<i64: 16, 128>}]} {
    %c0 = arith.constant 0 : index
    %0 = memref.load %arg1[%c0] : memref<1xf32, #tpu.memory_space<smem>>
    %c0_0 = arith.constant 0 : index
    %c0_1 = arith.constant 0 : index
    %1 = vector.load %arg2[%c0_0, %c0_1] : memref<16x128xf32, #tpu.memory_space<vmem>>, vector<16x128xf32>
    %c0_2 = arith.constant 0 : index
    %c0_3 = arith.constant 0 : index
    %2 = vector.load %arg3[%c0_2, %c0_3] : memref<16x128xf32, #tpu.memory_space<vmem>>, vector<16x128xf32>
    %3 = arith.mulf %1, %1 : vector<16x128xf32>
    %4 = arith.mulf %2, %2 : vector<16x128xf32>
    %5 = arith.addf %3, %4 : vector<16x128xf32>
    %6 = math.sqrt %5 : vector<16x128xf32>
    %7 = vector.broadcast %0 : f32 to vector<16x128xf32>
    %8 = arith.addf %6, %7 : vector<16x128xf32>
    %cst = arith.constant 0.000000e+00 : f32
    %9 = vector.broadcast %cst : f32 to vector<16x128xf32>
    %10 = arith.maximumf %8, %9 : vector<16x128xf32>
    %cst_4 = arith.constant 9.99999997E-7 : f32
    %11 = vector.broadcast %cst_4 : f32 to vector<16x128xf32>
    %12 = arith.addf %6, %11 : vector<16x128xf32>
    %13 = arith.divf %10, %12 : vector<16x128xf32>
    %14 = arith.mulf %1, %13 : vector<16x128xf32>
    %c0_5 = arith.constant 0 : index
    %c0_6 = arith.constant 0 : index
    %15 = vector.load %arg4[%c0_5, %c0_6] : memref<16x128xf32, #tpu.memory_space<vmem>>, vector<16x128xf32>
    tpu.vector_store %arg4[%c0_5, %c0_6], %14 {strides = array<i32>} : memref<16x128xf32, #tpu.memory_space<vmem>>, vector<16x128xf32>,
    %16 = arith.mulf %2, %13 : vector<16x128xf32>
    %c0_7 = arith.constant 0 : index
    %c0_8 = arith.constant 0 : index
    %17 = vector.load %arg5[%c0_7, %c0_8] : memref<16x128xf32, #tpu.memory_space<vmem>>, vector<16x128xf32>
    tpu.vector_store %arg5[%c0_7, %c0_8], %16 {strides = array<i32>} : memref<16x128xf32, #tpu.memory_space<vmem>>, vector<16x128xf32>,
    return
  }
  func.func @transform_0(%arg0: i32) -> i32 {
    %c0_i32 = arith.constant 0 : i32
    %c0_i32_0 = arith.constant 0 : i32
    return %c0_i32 : i32
  }
  func.func @transform_1(%arg0: i32) -> (i32, i32) {
    %c0_i32 = arith.constant 0 : i32
    %c0_i32_0 = arith.constant 0 : i32
    return %arg0, %c0_i32 : i32, i32
  }
  func.func @transform_2(%arg0: i32) -> (i32, i32) {
    %c0_i32 = arith.constant 0 : i32
    %c0_i32_0 = arith.constant 0 : i32
    return %arg0, %c0_i32 : i32, i32
  }
  func.func @transform_3(%arg0: i32) -> (i32, i32) {
    %c0_i32 = arith.constant 0 : i32
    %c0_i32_0 = arith.constant 0 : i32
    return %arg0, %c0_i32 : i32, i32
  }
  func.func @transform_4(%arg0: i32) -> (i32, i32) {
    %c0_i32 = arith.constant 0 : i32
    %c0_i32_0 = arith.constant 0 : i32
    return %arg0, %c0_i32 : i32, i32
  }
}

</mosaic_0001>

<bundles_post_ra>
// kernel: tpu_custom_call.1
= control target key start
LH: loop header
LB: loop body
LE: loop exit
PB: predicated region body
PF: predicated region fallthrough
CT: control target
= control target key end

     0   :  { %11 = vsyncpa [#allocation4], 0  ;;  %s336_s0 = inlined_call_operand.<no memory space> [shape: f32[1], index: 0, kind: input, shape index: {}]   ;;  %s337_s1 = inlined_call_operand.hbm [shape: f32[16,128], index: 1, kind: input, shape index: {}]   ;;  %s338_s2 = inlined_call_operand.hbm [shape: f32[16,128], index: 2, kind: input, shape index: {}]   ;;  %s339_s3 = inlined_call_operand.hbm [shape: f32[16,128], index: 3, kind: output, shape index: {0}]   ;;  %s340_s4 = inlined_call_operand.hbm [shape: f32[16,128], index: 4, kind: output, shape index: {1}]  }
   0x1   :  { %12 = vsyncpa [#allocation7], 0 }
   0x2   :  { %13 = vsyncpa [#allocation5], 0 }
   0x3   :  { %14 = vsyncpa [#allocation10], 0  ;;  %s235_s15 = smov [#allocation3]   ;;  %s139_s19 = scalar_lea.hbm %s337_s1, 256 }
   0x4   :  { %s22_s16 = sshll.u32 %s235_s15, 4  ;;  %p140_p0 = scmp.ne.s32.totalorder %s337_s1, %s139_s19  ;;  %s23_s16 = int_to_ptr.vmem [resolvable:$true] %s22_s16 }
   0x5   :  { %p143_p1 = scmp.lt.u32.totalorder %s139_s19, %s337_s1 }
   0x7   :  { %p145_p2 = pnand %p143_p1, %p140_p0 }
   0x9   :  { %148 = shalt.err (!%p145_p2)
}
   0xa   :  { %s149_s24 = scalar_lea.vmem %s23_s16, 256  ;;  %p154_p4 = scmp.lt.s32.totalorder %s23_s16, %s23_s16 }
   0xb   :  { %p150_p3 = scmp.ne.s32.totalorder %s23_s16, %s149_s24  ;;  %p155_p5 = scmp.lt.s32.totalorder %s149_s24, %s149_s24 }
   0xd   :  { %p156_p6 = por %p155_p5, %p154_p4 }
   0xf   :  { %p157_p7 = pnand %p156_p6, %p150_p3 }
  0x11   :  { %160 = shalt.err (!%p157_p7)
}
  0x12   :  { %s236_s25 = smov 128   ;;  %s237_s26 = smov 8  }
  0x13   :  { %28 = dma.hbm_to_vmem [thread:$0]  %s337_s1, 256, %s23_s16, [#allocation4], %s236_s25, %s236_s25, %s237_s26  }
  0x14   :  { %s238_s29 = smov [#allocation6]   ;;  %s161_s7 = scalar_lea.hbm %s338_s2, 256 }
  0x15   :  { %s34_s30 = sshll.u32 %s238_s29, 4  ;;  %p162_p8 = scmp.ne.s32.totalorder %s338_s2, %s161_s7  ;;  %s35_s30 = int_to_ptr.vmem [resolvable:$true] %s34_s30 }
  0x16   :  { %p165_p9 = scmp.lt.u32.totalorder %s161_s7, %s338_s2 }
  0x18   :  { %p167_p10 = pnand %p165_p9, %p162_p8 }
  0x1a   :  { %170 = shalt.err (!%p167_p10)
}
  0x1b   :  { %s171_s12 = scalar_lea.vmem %s35_s30, 256  ;;  %p176_p12 = scmp.lt.s32.totalorder %s35_s30, %s35_s30 }
  0x1c   :  { %p172_p11 = scmp.ne.s32.totalorder %s35_s30, %s171_s12  ;;  %p177_p13 = scmp.lt.s32.totalorder %s171_s12, %s171_s12 }
  0x1e   :  { %p178_p0 = por %p177_p13, %p176_p12 }
  0x20   :  { %p179_p1 = pnand %p178_p0, %p172_p11 }
  0x22   :  { %182 = shalt.err (!%p179_p1)
}
  0x23   :  { %40 = dma.hbm_to_vmem [thread:$0]  %s338_s2, 256, %s35_s30, [#allocation7], %s236_s25, %s236_s25, %s237_s26  }
  0x24   :  { %227 = dma.done.wait [#allocation4], 256  }
  0x25   :  { %228 = vsyncadd [#allocation4], 4294967040 }
  0x26   :  { %229 = dma.done.wait [#allocation7], 256  }
  0x27   :  { %230 = vsyncadd [#allocation7], 4294967040  ;;  %v48_v0 = vld [vmem:[#allocation3] sm:$0xff]  ;;  %v50_v1 = vld [vmem:[#allocation6] sm:$0xff]  ;;  %v72_v22 = vstv %s336_s0  ;;  %s239_s15 = smov [#allocation8]   ;;  %s240_s17 = smov [#allocation9]  }
  0x28   :  { %v49_v2 = vld [vmem:[#allocation3 + $0x8] sm:$0xff]  ;;  %v52_v3 = vmul.f32 %v48_v0, %v48_v0  ;;  %v54_v4 = vmul.f32 %v50_v1, %v50_v1  ;;  %v51_v5 = vld [vmem:[#allocation6 + $0x8] sm:$0xff]  ;;  %s96_s16 = sshll.u32 %s239_s15, 4  ;;  %s108_s18 = sshll.u32 %s240_s17, 4  ;;  %s97_s16 = int_to_ptr.vmem [resolvable:$true] %s96_s16  ;;  %s299_s18 = int_to_ptr.vmem [resolvable:$true] %s108_s18 }
  0x29   :  { %v53_v6 = vmul.f32 %v49_v2, %v49_v2  ;;  %v55_v7 = vmul.f32 %v51_v5, %v51_v5  ;;  %s183_s0 = scalar_lea.vmem %s97_s16, 256  ;;  %p188_p3 = scmp.lt.s32.totalorder %s97_s16, %s97_s16 }
  0x2a   :  { %v56_v8 = vadd.f32 %v54_v4, %v52_v3  ;;  %p184_p2 = scmp.ne.s32.totalorder %s97_s16, %s183_s0  ;;  %p189_p4 = scmp.lt.s32.totalorder %s183_s0, %s183_s0 }
  0x2b   :  { %v57_v9 = vadd.f32 %v55_v7, %v53_v6 }
  0x2c   :  { %131 = vrsqrt.f32 %v56_v8  ;;  %vm60_vm0 = vcmp.eq.f32.partialorder %v56_v8, inf  ;;  %v63_v11 = vand.u32 2147483648, %v56_v8  ;;  %vm62_vm1 = vcmp.eq.f32.partialorder %v56_v8, 0.0  ;;  %p190_p5 = por %p189_p4, %p188_p3 }
  0x2d   :  { %133 = vrsqrt.f32 %v57_v9  ;;  %vm67_vm2 = vcmp.eq.f32.partialorder %v57_v9, inf  ;;  %v70_v14 = vand.u32 2147483648, %v57_v9  ;;  %vm69_vm3 = vcmp.eq.f32.partialorder %v57_v9, 0.0 }
  0x2e   :  { %p191_p6 = pnand %p190_p5, %p184_p2 }
  0x36   :  { %v132_v10 = vpop.eup %131 }
  0x37   :  { %v134_v12 = vpop.eup %133  ;;  %v59_v13 = vmul.f32 %v132_v10, %v56_v8 }
  0x38   :  { %v66_v15 = vmul.f32 %v134_v12, %v57_v9 }
  0x39   :  { %v61_v16 = vsel %vm60_vm0, %v56_v8, %v59_v13 }
  0x3a   :  { %v64_v17 = vsel %vm62_vm1, %v63_v11, %v61_v16  ;;  %v68_v18 = vsel %vm67_vm2, %v57_v9, %v66_v15 }
  0x3b   :  { %v77_v19 = vadd.f32 1e-06, %v64_v17  ;;  %v71_v20 = vsel %vm69_vm3, %v70_v14, %v68_v18  ;;  %v73_v23 = vadd.f32 %v72_v22, %v64_v17 }
  0x3c   :  { %v78_v21 = vadd.f32 1e-06, %v71_v20  ;;  %v74_v24 = vadd.f32 %v72_v22, %v71_v20 }
  0x3d   :  { %135 = vrcp.f32 %v77_v19  ;;  %v75_v25 = vmax.f32 %v73_v23, 0.0 }
  0x3e   :  { %137 = vrcp.f32 %v78_v21  ;;  %v76_v26 = vmax.f32 %v74_v24, 0.0 }
  0x47   :  { %v136_v27 = vpop.eup %135 }
  0x48   :  { %v138_v28 = vpop.eup %137  ;;  %v80_v29 = vmul.f32 %v136_v27, %v75_v25 }
  0x49   :  { %v82_v30 = vmul.f32 %v138_v28, %v76_v26 }
  0x4a   :  { %v83_v31 = vmul.f32 %v80_v29, %v48_v0  ;;  %v87_v32 = vmul.f32 %v80_v29, %v50_v1 }
  0x4b   :  { %v84_v33 = vmul.f32 %v82_v30, %v49_v2  ;;  %v88_v34 = vmul.f32 %v82_v30, %v51_v5 }
  0x4c   :  { %85 = vst [vmem:[#allocation8] sm:$0xff] %v83_v31  ;;  %89 = vst [vmem:[#allocation9] sm:$0xff] %v87_v32 }
  0x4d   :  { %86 = vst [vmem:[#allocation8 + $0x8] sm:$0xff] %v84_v33  ;;  %90 = vst [vmem:[#allocation9 + $0x8] sm:$0xff] %v88_v34 }
  0x4e   :  { %194 = shalt.err (!%p191_p6)
}
  0x4f   :  { %s195_s21 = scalar_lea.hbm %s339_s3, 256 }
  0x50   :  { %p196_p7 = scmp.ne.s32.totalorder %s339_s3, %s195_s21  ;;  %p199_p8 = scmp.lt.u32.totalorder %s195_s21, %s339_s3 }
  0x52   :  { %p201_p9 = pnand %p199_p8, %p196_p7 }
  0x54   :  { %204 = shalt.err (!%p201_p9)
}
  0x55   :  { %102 = dma.vmem_to_hbm [thread:$0]  %s97_s16, 256, %s339_s3, [#allocation5], %s236_s25, %s236_s25, %s237_s26  }
  0x56   :  { %s205_s30 = scalar_lea.vmem %s299_s18, 256  ;;  %p210_p11 = scmp.lt.s32.totalorder %s299_s18, %s299_s18 }
  0x57   :  { %p206_p10 = scmp.ne.s32.totalorder %s299_s18, %s205_s30  ;;  %p211_p12 = scmp.lt.s32.totalorder %s205_s30, %s205_s30 }
  0x59   :  { %p212_p13 = por %p211_p12, %p210_p11 }
  0x5b   :  { %p213_p0 = pnand %p212_p13, %p206_p10 }
  0x5d   :  { %216 = shalt.err (!%p213_p0)
}
  0x5e   :  { %s217_s7 = scalar_lea.hbm %s340_s4, 256 }
  0x5f   :  { %p218_p1 = scmp.ne.s32.totalorder %s340_s4, %s217_s7  ;;  %p221_p2 = scmp.lt.u32.totalorder %s217_s7, %s340_s4 }
  0x61   :  { %p223_p3 = pnand %p221_p2, %p218_p1 }
  0x63   :  { %226 = shalt.err (!%p223_p3)
}
  0x64   :  { %114 = dma.vmem_to_hbm [thread:$0]  %s299_s18, 256, %s340_s4, [#allocation10], %s236_s25, %s236_s25, %s237_s26  }
  0x65   :  { %231 = dma.done.wait [#allocation5], 256  }
  0x66   :  { %232 = vsyncadd [#allocation5], 4294967040 }
  0x67   :  { %233 = dma.done.wait [#allocation10], 256  }
  0x68   :  { %234 = vsyncadd [#allocation10], 4294967040 }
  0x69   :  { %121 = vsyncpa [#allocation4], 1 }
  0x6a   :  { %122 = vsyncpa [#allocation7], 1 }
  0x6b   :  { %123 = vsyncpa [#allocation5], 1 }
  0x6c   :  { %124 = vsyncpa [#allocation10], 1 }

</bundles_post_ra>
